<compile_context>
chip_gen: v7x
topology: tpu7x:2x2x1
jax: 0.10.0
libtpu: 0.0.40
codegen_flags: <defaults>
</compile_context>

<pallas_src>
import jax
import jax.numpy as jnp
from jax.experimental import pallas as pl
from jax.experimental.pallas import tpu as pltpu

SLOPE = 2.0
SOFT = True  # matches Clipper(slope=2, soft=True)

_TARGET_BLOCK_BYTES = 1 << 20  # ~1 MiB per input block
_MAX_LANES = 8192


def clipper_kernel(x_ref, o_ref):
    x = x_ref[...]
    y = SLOPE * x
    if SOFT:
        o_ref[...] = jnp.tanh(y)               # EUP transcendental (free slot)
    else:
        o_ref[...] = jnp.clip(y, -1.0, 1.0)    # hard clip after slope (PyTorch semantics)


def _sublane_multiple(dtype) -> int:
    # f32 -> 8, bf16 -> 16, int8/fp8 -> 32 (sublane packing rule)
    itemsize = jnp.dtype(dtype).itemsize
    return max(8, 32 // itemsize)


def clipper(x: jax.Array) -> jax.Array:
    """Applies y = tanh(slope * x) elementwise via a Pallas TPU kernel."""
    orig_shape = x.shape
    dtype = x.dtype
    n = x.size
    if n == 0:
        return x

    itemsize = jnp.dtype(dtype).itemsize
    sub_mult = _sublane_multiple(dtype)

    # Pick a wide lane-dense last dim (multiple of 128), as wide as the data allows.
    lanes = 128
    while lanes < _MAX_LANES and lanes * 2 * sub_mult <= n:
        lanes *= 2

    rows = -(-n // lanes)  # ceil

    # Block rows: ~1 MiB per block, multiple of the sublane packing.
    target_rows = max(sub_mult, _TARGET_BLOCK_BYTES // (lanes * itemsize))
    block_rows = min(target_rows, -(-rows // sub_mult) * sub_mult)
    block_rows = max(sub_mult, (block_rows // sub_mult) * sub_mult)

    rows_padded = -(-rows // block_rows) * block_rows
    n_padded = rows_padded * lanes

    x_flat = x.reshape(-1)
    padded = n_padded != n
    if padded:
        # Single padding pass; tanh(0) == 0 so padding is benign and sliced off.
        x_flat = jnp.pad(x_flat, (0, n_padded - n))
    x2d = x_flat.reshape(rows_padded, lanes)

    grid = (rows_padded // block_rows,)
    out2d = pl.pallas_call(
        clipper_kernel,
        out_shape=jax.ShapeDtypeStruct((rows_padded, lanes), dtype),
        grid=grid,
        in_specs=[pl.BlockSpec((block_rows, lanes), lambda i: (i, 0))],
        out_specs=pl.BlockSpec((block_rows, lanes), lambda i: (i, 0)),
        compiler_params=pltpu.CompilerParams(
            dimension_semantics=("parallel",),
        ),
    )(x2d)

    if padded:
        return out2d.reshape(-1)[:n].reshape(orig_shape)
    return out2d.reshape(orig_shape)


if __name__ == "__main__":
    key = jax.random.PRNGKey(0)

    # Small NCHW input consistent with the module's forward.
    x = jax.random.normal(key, (2, 4, 16, 16), dtype=jnp.float32)
    y = jax.block_until_ready(clipper(x))
    y_ref = jnp.tanh(SLOPE * x)
    assert y.shape == x.shape and y.dtype == x.dtype
    assert jnp.allclose(y, y_ref, atol=1e-6), "mismatch vs reference"

    # Ragged (non-128-aligned) shape to exercise the single-pad path.
    x2 = jax.random.normal(jax.random.PRNGKey(1), (3, 5, 7), dtype=jnp.float32)
    y2 = jax.block_until_ready(clipper(x2))
    assert jnp.allclose(y2, jnp.tanh(SLOPE * x2), atol=1e-6), "ragged mismatch"

    print("KERNEL_OK")
</pallas_src>

<mosaic_0001>
module attributes {stable_mosaic.version = 11 : i64} {
  func.func @clipper_kernel(%arg0: i32, %arg1: memref<8x256xf32, #tpu.memory_space<vmem>>, %arg2: memref<8x256xf32, #tpu.memory_space<vmem>>) attributes {dimension_semantics = [#tpu.dimension_semantics<parallel>], iteration_bounds = array<i64: 1>, scalar_prefetch = 0 : i64, scratch_operands = 0 : i64, tpu.core_type = #tpu.core_type<tc>, window_params = [{transform_indices = @transform_0, window_bounds = array<i64: 8, 256>}, {transform_indices = @transform_1, window_bounds = array<i64: 8, 256>}]} {
    %c0 = arith.constant 0 : index
    %c0_0 = arith.constant 0 : index
    %0 = vector.load %arg1[%c0, %c0_0] : memref<8x256xf32, #tpu.memory_space<vmem>>, vector<8x256xf32>
    %cst = arith.constant 2.000000e+00 : f32
    %1 = vector.broadcast %cst : f32 to vector<8x256xf32>
    %2 = arith.mulf %1, %0 : vector<8x256xf32>
    %3 = math.tanh %2 : vector<8x256xf32>
    %c0_1 = arith.constant 0 : index
    %c0_2 = arith.constant 0 : index
    %4 = vector.load %arg2[%c0_1, %c0_2] : memref<8x256xf32, #tpu.memory_space<vmem>>, vector<8x256xf32>
    tpu.vector_store %arg2[%c0_1, %c0_2], %3 {strides = array<i32>} : memref<8x256xf32, #tpu.memory_space<vmem>>, vector<8x256xf32>,
    return
  }
  func.func @transform_0(%arg0: i32) -> (i32, i32) {
    %c0_i32 = arith.constant 0 : i32
    %c0_i32_0 = arith.constant 0 : i32
    return %arg0, %c0_i32 : i32, i32
  }
  func.func @transform_1(%arg0: i32) -> (i32, i32) {
    %c0_i32 = arith.constant 0 : i32
    %c0_i32_0 = arith.constant 0 : i32
    return %arg0, %c0_i32 : i32, i32
  }
}

</mosaic_0001>

<bundles_post_ra>
// kernel: tpu_custom_call.1
= control target key start
LH: loop header
LB: loop body
LE: loop exit
PB: predicated region body
PF: predicated region fallthrough
CT: control target
= control target key end

     0   :  { %6 = vsyncpa [#allocation3], 0  ;;  %s134_s0 = inlined_call_operand.hbm [shape: f32[8,256], index: 0, kind: input, shape index: {}]   ;;  %s135_s1 = inlined_call_operand.hbm [shape: f32[8,256], index: 1, kind: output, shape index: {}]  }
   0x1   :  { %7 = vsyncpa [#allocation4], 0  ;;  %s98_s6 = smov [#allocation2]   ;;  %s50_s10 = scalar_lea.hbm %s134_s0, 256 }
   0x2   :  { %s14_s7 = sshll.u32 %s98_s6, 4  ;;  %p51_p0 = scmp.ne.s32.totalorder %s134_s0, %s50_s10  ;;  %s15_s7 = int_to_ptr.vmem [resolvable:$true] %s14_s7 }
   0x3   :  { %p54_p1 = scmp.lt.u32.totalorder %s50_s10, %s134_s0 }
   0x5   :  { %p56_p2 = pnand %p54_p1, %p51_p0 }
   0x7   :  { %59 = shalt.err (!%p56_p2)
}
   0x8   :  { %s60_s15 = scalar_lea.vmem %s15_s7, 256  ;;  %p65_p4 = scmp.lt.s32.totalorder %s15_s7, %s15_s7 }
   0x9   :  { %p61_p3 = scmp.ne.s32.totalorder %s15_s7, %s60_s15  ;;  %p66_p5 = scmp.lt.s32.totalorder %s60_s15, %s60_s15 }
   0xb   :  { %p67_p6 = por %p66_p5, %p65_p4 }
   0xd   :  { %p68_p7 = pnand %p67_p6, %p61_p3 }
   0xf   :  { %71 = shalt.err (!%p68_p7)
}
  0x10   :  { %17 = dma.hbm_to_vmem [thread:$0]  %s134_s0, 256, %s15_s7, [#allocation3]  }
  0x11   :  { %94 = dma.done.wait [#allocation3], 256  }
  0x12   :  { %95 = vsyncadd [#allocation3], 4294967040  ;;  %v21_v0 = vld [vmem:[#allocation2] sm:$0xff]  ;;  %v22_v1 = vld [vmem:[#allocation2 + $0x8] sm:$0xff]  ;;  %s99_s18 = smov [#allocation5]  }
  0x13   :  { %v23_v2 = vmul.f32 2.0, %v21_v0  ;;  %v24_v3 = vmul.f32 2.0, %v22_v1  ;;  %s35_s19 = sshll.u32 %s99_s18, 4  ;;  %s36_s19 = int_to_ptr.vmem [resolvable:$true] %s35_s19 }
  0x14   :  { %s72_s20 = scalar_lea.vmem %s36_s19, 256  ;;  %p77_p9 = scmp.lt.s32.totalorder %s36_s19, %s36_s19 }
  0x15   :  { %46 = vtanh.f32 %v23_v2  ;;  %p73_p8 = scmp.ne.s32.totalorder %s36_s19, %s72_s20  ;;  %p78_p10 = scmp.lt.s32.totalorder %s72_s20, %s72_s20 }
  0x16   :  { %48 = vtanh.f32 %v24_v3 }
  0x17   :  { %p79_p11 = por %p78_p10, %p77_p9 }
  0x19   :  { %p80_p12 = pnand %p79_p11, %p73_p8 }
  0x1f   :  { %v47_v4 = vpop.eup %46 }
  0x20   :  { %v49_v5 = vpop.eup %48  ;;  %27 = vst [vmem:[#allocation5] sm:$0xff] %v47_v4 }
  0x21   :  { %28 = vst [vmem:[#allocation5 + $0x8] sm:$0xff] %v49_v5 }
  0x22   :  { %83 = shalt.err (!%p80_p12)
}
  0x23   :  { %s84_s22 = scalar_lea.hbm %s135_s1, 256 }
  0x24   :  { %p85_p13 = scmp.ne.s32.totalorder %s135_s1, %s84_s22  ;;  %p88_p0 = scmp.lt.u32.totalorder %s84_s22, %s135_s1 }
  0x26   :  { %p90_p1 = pnand %p88_p0, %p85_p13 }
  0x28   :  { %93 = shalt.err (!%p90_p1)
}
  0x29   :  { %38 = dma.vmem_to_hbm [thread:$0]  %s36_s19, 256, %s135_s1, [#allocation4]  }
  0x2a   :  { %96 = dma.done.wait [#allocation4], 256  }
  0x2b   :  { %97 = vsyncadd [#allocation4], 4294967040 }
  0x2c   :  { %42 = vsyncpa [#allocation3], 1 }
  0x2d   :  { %43 = vsyncpa [#allocation4], 1 }

</bundles_post_ra>
